<compile_context>
chip_gen: v7x
topology: tpu7x:2x2x1
jax: 0.10.0
libtpu: 0.0.40
codegen_flags: <defaults>
</compile_context>

<pallas_src>
import functools

import jax
import jax.numpy as jnp
from jax.experimental import pallas as pl
from jax.experimental.pallas import tpu as pltpu


# ----------------------------- config (synthetic) -----------------------------
NUM_USERS = 32
NUM_ITEMS = 32            # reference module uses num_users for item tables too
LATENT_DIM_GMF = 8
LATENT_DIM_MLP = 8
LAYERS = [2 * LATENT_DIM_MLP, 32, 16, 8]   # MLP tower sizes (first = 2*latent_dim_mlp)
BATCH = 8

_LANES = 128


def _round_up(x, m):
    return (x + m - 1) // m * m


# ------------------------------- Pallas kernel --------------------------------
def _neumf_kernel(d_mlp, d_gmf, n_layers, tb,
                  u_idx_ref, i_idx_ref,              # SMEM scalar prefetch
                  user_hbm, item_hbm, w_ref, misc_ref,   # inputs
                  out_ref,                            # output (1, 1, tb)
                  u_buf, i_buf, dma_sem):             # scratch
    """Fused NeuMF forward for one batch tile (gather + MLP tower + GMF + head).

    user_hbm / item_hbm : (num_rows, emb_dim) packed [mlp | gmf] tables in HBM
    w_ref               : (n_layers+1, 128, 128) fc weight chunks
                          chunk 0 = W0[:d_mlp] expanded to emb_dim rows (gmf rows 0)
                          chunk 1 = W0[d_mlp:] expanded to emb_dim rows (gmf rows 0)
                          chunk l+1 = W_l zero-padded to 128x128
    misc_ref            : (8, 128) f32: rows 0..n_layers-1 biases,
                          row n_layers = affine_w[:last], row n_layers+1 =
                          affine_w[last:], row n_layers+2 col 0 = affine bias
    u_buf / i_buf       : (tb, emb_dim) VMEM gather destinations
    """
    emb_dim = d_mlp + d_gmf
    base = pl.program_id(0) * tb

    # ---- in-kernel embedding gather: per-row HBM -> VMEM DMAs ----
    @pl.loop(0, tb)
    def _issue(r):
        uid = u_idx_ref[base + r]
        iid = i_idx_ref[base + r]
        pltpu.make_async_copy(user_hbm.at[pl.ds(uid, 1), :],
                              u_buf.at[pl.ds(r, 1), :], dma_sem).start()
        pltpu.make_async_copy(item_hbm.at[pl.ds(iid, 1), :],
                              i_buf.at[pl.ds(r, 1), :], dma_sem).start()

    @pl.loop(0, tb)
    def _drain(r):
        # Same-shaped wait descriptors; semaphore counts bytes, so 2*tb waits
        # balance the 2*tb starts above.
        pltpu.make_async_copy(user_hbm.at[pl.ds(0, 1), :],
                              u_buf.at[pl.ds(0, 1), :], dma_sem).wait()
        pltpu.make_async_copy(item_hbm.at[pl.ds(0, 1), :],
                              i_buf.at[pl.ds(0, 1), :], dma_sem).wait()

    ue = u_buf[...]                              # (tb, emb_dim) f32
    ie = i_buf[...]
    w_dt = w_ref.dtype

    # GMF branch: elementwise product of the gmf halves (stays f32, VPU).
    gmf_vec = ue[:, d_mlp:] * ie[:, d_mlp:]      # (tb, d_gmf)

    # First MLP layer: split-weight form of cat([ue_mlp, ie_mlp]) @ W0 + b0.
    # Chunks are expanded to emb_dim rows (gmf rows are zero), so the full packed
    # embedding rows can be fed straight to the MXU with no concat / no slicing.
    h = (jnp.dot(ue.astype(w_dt), w_ref[0, :emb_dim, :],
                 preferred_element_type=jnp.float32)
         + jnp.dot(ie.astype(w_dt), w_ref[1, :emb_dim, :],
                   preferred_element_type=jnp.float32)
         + misc_ref[0:1, :])
    h = jnp.maximum(h, 0.0)                      # (tb, 128); padded cols stay 0

    # Remaining MLP layers: Linear + ReLU on full 128-lane (zero-padded) tiles.
    for layer in range(1, n_layers):
        h = (jnp.dot(h.astype(w_dt), w_ref[layer + 1],
                     preferred_element_type=jnp.float32)
             + misc_ref[layer:layer + 1, :])
        h = jnp.maximum(h, 0.0)

    # Final N=1 affine head on VPU/XLU (mul + cross-lane reduce) — avoids a
    # single-output-lane MXU matmul.  Padded lanes contribute 0.
    w_head_mlp = misc_ref[n_layers:n_layers + 1, :]            # (1, 128)
    w_head_gmf = misc_ref[n_layers + 1:n_layers + 2, :d_gmf]   # (1, d_gmf)
    b_head = misc_ref[n_layers + 2:n_layers + 3, 0:1]          # (1, 1)
    logits = (jnp.sum(h * w_head_mlp, axis=-1, keepdims=True)
              + jnp.sum(gmf_vec * w_head_gmf, axis=-1, keepdims=True)
              + b_head)                                        # (tb, 1)
    rating = jax.nn.sigmoid(logits)

    # Lane-dense store: one (1, tb) row per tile instead of tb masked 1-lane rows.
    out_ref[...] = jnp.transpose(rating, (1, 0)).reshape(1, 1, tb)


def neumf_forward(user_table, item_table, w_slab, misc, u_idx, i_idx, *,
                  d_mlp, d_gmf, n_layers, tile_b=512):
    batch = int(u_idx.shape[0])
    emb_dim = d_mlp + d_gmf

    # Batch tile: multiple of 8 sublanes.  When batch is large enough, cap the
    # tile at half the padded batch so there are always >= 2 grid steps and the
    # "parallel" axis can shard across v7x's two TensorCores.
    padded8 = _round_up(batch, 8)
    tb = min(tile_b, padded8)
    if padded8 >= 16:
        tb = min(tb, _round_up((padded8 + 1) // 2, 8))
    padded = _round_up(padded8, tb)
    n_tiles = padded // tb

    if padded != batch:
        u_idx = jnp.pad(u_idx, (0, padded - batch))   # pad with index 0 (valid row)
        i_idx = jnp.pad(i_idx, (0, padded - batch))

    kernel = functools.partial(_neumf_kernel, d_mlp, d_gmf, n_layers, tb)

    # Advisory cost hint (weights are zero-padded; this is an upper bound).
    n_chunks = w_slab.shape[0]
    flops = 2 * padded * n_chunks * _LANES * _LANES + 6 * padded * _LANES
    bytes_accessed = (4 * 2 * padded * emb_dim
                      + w_slab.dtype.itemsize * int(w_slab.size)
                      + 4 * int(misc.size) + 4 * padded)
    cost = pl.CostEstimate(flops=flops, transcendentals=padded,
                           bytes_accessed=bytes_accessed)

    grid_spec = pltpu.PrefetchScalarGridSpec(
        num_scalar_prefetch=2,                 # u_idx, i_idx -> SMEM
        grid=(n_tiles,),
        in_specs=[
            pl.BlockSpec(memory_space=pl.ANY),   # user_table stays in HBM
            pl.BlockSpec(memory_space=pl.ANY),   # item_table stays in HBM
            # Weight slabs: constant block index -> VMEM-resident across tiles.
            pl.BlockSpec(w_slab.shape, lambda b, u, i: (0, 0, 0)),
            pl.BlockSpec(misc.shape, lambda b, u, i: (0, 0)),
        ],
        out_specs=pl.BlockSpec((1, 1, tb), lambda b, u, i: (b, 0, 0)),
        scratch_shapes=[
            pltpu.VMEM((tb, emb_dim), user_table.dtype),
            pltpu.VMEM((tb, emb_dim), item_table.dtype),
            pltpu.SemaphoreType.DMA,
        ],
    )

    out = pl.pallas_call(
        kernel,
        out_shape=jax.ShapeDtypeStruct((n_tiles, 1, tb), jnp.float32),
        grid_spec=grid_spec,
        compiler_params=pltpu.CompilerParams(
            dimension_semantics=("parallel",)),
        cost_estimate=cost,
    )(u_idx, i_idx, user_table, item_table, w_slab, misc)

    return out.reshape(padded, 1)[:batch]


# ---------------------------------- glue / init --------------------------------
def init_params(key):
    keys = jax.random.split(key, 8 + 2 * (len(LAYERS) - 1))
    ki = iter(keys)

    # embedding tables (torch.nn.Embedding default init ~ N(0,1))
    emb_user_mlp = jax.random.normal(next(ki), (NUM_USERS, LATENT_DIM_MLP), jnp.float32)
    emb_item_mlp = jax.random.normal(next(ki), (NUM_ITEMS, LATENT_DIM_MLP), jnp.float32)
    emb_user_gmf = jax.random.normal(next(ki), (NUM_USERS, LATENT_DIM_GMF), jnp.float32)
    emb_item_gmf = jax.random.normal(next(ki), (NUM_ITEMS, LATENT_DIM_GMF), jnp.float32)

    # fc layers stored as (in, out) so the kernel does x @ W + b
    fc_ws, fc_bs = [], []
    for in_size, out_size in zip(LAYERS[:-1], LAYERS[1:]):
        bound = 1.0 / float(jnp.sqrt(in_size))
        fc_ws.append(jax.random.uniform(next(ki), (in_size, out_size), jnp.float32,
                                        -bound, bound))
        fc_bs.append(jax.random.uniform(next(ki), (1, out_size), jnp.float32,
                                        -bound, bound))

    affine_in = LAYERS[-1] + LATENT_DIM_GMF
    bound = 1.0 / float(jnp.sqrt(affine_in))
    affine_w = jax.random.uniform(next(ki), (affine_in, 1), jnp.float32, -bound, bound)
    affine_b = jax.random.uniform(next(ki), (1, 1), jnp.float32, -bound, bound)

    return dict(emb_user_mlp=emb_user_mlp, emb_item_mlp=emb_item_mlp,
                emb_user_gmf=emb_user_gmf, emb_item_gmf=emb_item_gmf,
                fc_ws=fc_ws, fc_bs=fc_bs, affine_w=affine_w, affine_b=affine_b)


def pack_params(params, *, matmul_dtype=jnp.float32):
    """Pack torch-layout params into dense, 128-lane-padded slabs (off hot path).

    matmul_dtype=jnp.bfloat16 is recommended for v6e/v7x (MXU-native operands,
    f32 accumulation); keep f32 for v5e or when tight tolerances are needed.
    """
    d_mlp = params["emb_user_mlp"].shape[1]
    d_gmf = params["emb_user_gmf"].shape[1]
    fc_ws, fc_bs = params["fc_ws"], params["fc_bs"]
    n_layers = len(fc_ws)

    # Packed embedding tables: [mlp | gmf] per row; elementwise path stays f32.
    user_table = jnp.concatenate([params["emb_user_mlp"], params["emb_user_gmf"]], axis=1)
    item_table = jnp.concatenate([params["emb_item_mlp"], params["emb_item_gmf"]], axis=1)

    # Weight slab: (n_layers+1, 128, 128).  First layer is split into user/item
    # halves, each expanded to emb_dim rows (gmf rows zero) so the kernel can
    # multiply the packed embedding rows directly (no concat, no activation slice).
    n_chunks = n_layers + 1
    w0 = fc_ws[0]
    n0 = w0.shape[1]
    w_slab = jnp.zeros((n_chunks, _LANES, _LANES), jnp.float32)
    w_slab = w_slab.at[0, :d_mlp, :n0].set(w0[:d_mlp])
    w_slab = w_slab.at[1, :d_mlp, :n0].set(w0[d_mlp:2 * d_mlp])
    for li in range(1, n_layers):
        w = fc_ws[li]
        w_slab = w_slab.at[li + 1, :w.shape[0], :w.shape[1]].set(w)
    w_slab = w_slab.astype(matmul_dtype)

    # Misc slab (f32, 128 lanes): fc biases + split head weights + head bias.
    affine_w = params["affine_w"]
    affine_b = params["affine_b"]
    last = fc_ws[-1].shape[1]
    misc = jnp.zeros((_round_up(n_layers + 3, 8), _LANES), jnp.float32)
    for li, b in enumerate(fc_bs):
        misc = misc.at[li, :b.shape[-1]].set(b.reshape(-1))
    misc = misc.at[n_layers, :last].set(affine_w[:last, 0])
    misc = misc.at[n_layers + 1, :d_gmf].set(affine_w[last:, 0])
    misc = misc.at[n_layers + 2, 0].set(affine_b.reshape(()))

    arrays = dict(user_table=user_table, item_table=item_table,
                  w_slab=w_slab, misc=misc)
    meta = dict(d_mlp=d_mlp, d_gmf=d_gmf, n_layers=n_layers)
    return arrays, meta


@functools.partial(jax.jit,
                   static_argnames=("d_mlp", "d_gmf", "n_layers", "tile_b"))
def neumf(user_table, item_table, w_slab, misc, user_indices, item_indices,
          *, d_mlp, d_gmf, n_layers, tile_b=512):
    # No wrapper-side gathers: indices go straight into the kernel via scalar
    # prefetch; the tables stay in HBM and are gathered with in-kernel DMAs.
    return neumf_forward(user_table, item_table, w_slab, misc,
                         user_indices, item_indices,
                         d_mlp=d_mlp, d_gmf=d_gmf, n_layers=n_layers,
                         tile_b=tile_b)


# pure-JAX reference (unpacked params) for sanity checking
def neumf_ref(params, user_indices, item_indices):
    ue_mlp = jnp.take(params["emb_user_mlp"], user_indices, axis=0)
    ie_mlp = jnp.take(params["emb_item_mlp"], item_indices, axis=0)
    ue_gmf = jnp.take(params["emb_user_gmf"], user_indices, axis=0)
    ie_gmf = jnp.take(params["emb_item_gmf"], item_indices, axis=0)
    mlp_vec = jnp.concatenate([ue_mlp, ie_mlp], axis=-1)
    gmf_vec = ue_gmf * ie_gmf
    for w, b in zip(params["fc_ws"], params["fc_bs"]):
        mlp_vec = jnp.maximum(mlp_vec @ w + b, 0.0)
    vec = jnp.concatenate([mlp_vec, gmf_vec], axis=-1)
    return jax.nn.sigmoid(vec @ params["affine_w"] + params["affine_b"])


if __name__ == "__main__":
    key = jax.random.PRNGKey(0)
    pkey, ukey, ikey = jax.random.split(key, 3)
    params = init_params(pkey)
    arrays, meta = pack_params(params)          # f32 matmul path for the demo

    user_indices = jax.random.randint(ukey, (BATCH,), 0, NUM_USERS, dtype=jnp.int32)
    item_indices = jax.random.randint(ikey, (BATCH,), 0, NUM_ITEMS, dtype=jnp.int32)

    out = neumf(arrays["user_table"], arrays["item_table"],
                arrays["w_slab"], arrays["misc"],
                user_indices, item_indices,
                d_mlp=meta["d_mlp"], d_gmf=meta["d_gmf"],
                n_layers=meta["n_layers"])
    out = jax.block_until_ready(out)

    ref = neumf_ref(params, user_indices, item_indices)
    assert out.shape == (BATCH, 1)
    assert jnp.allclose(out, ref, atol=1e-4, rtol=1e-4), (out, ref)
    print("KERNEL_OK")
</pallas_src>

<mosaic_0001>
module attributes {stable_mosaic.version = 11 : i64} {
  func.func @_neumf_kernel(%arg0: i32, %arg1: memref<8xi32, #tpu.memory_space<smem>>, %arg2: memref<8xi32, #tpu.memory_space<smem>>, %arg3: memref<32x16xf32, #tpu.memory_space<any>>, %arg4: memref<32x16xf32, #tpu.memory_space<any>>, %arg5: memref<4x128x128xf32, #tpu.memory_space<vmem>>, %arg6: memref<8x128xf32, #tpu.memory_space<vmem>>, %arg7: memref<1x1x8xf32, #tpu.memory_space<vmem>>, %arg8: memref<8x16xf32, #tpu.memory_space<vmem>>, %arg9: memref<8x16xf32, #tpu.memory_space<vmem>>, %arg10: memref<!tpu.dma_semaphore, #tpu.memory_space<semaphore_mem>>) attributes {dimension_semantics = [#tpu.dimension_semantics<parallel>], iteration_bounds = array<i64: 1>, scalar_prefetch = 2 : i64, scratch_operands = 3 : i64, tpu.core_type = #tpu.core_type<tc>, window_params = [{}, {}, {pipeline_mode = #tpu.pipeline_mode<synchronous>, transform_indices = @transform_2, window_bounds = array<i64: 4, 128, 128>}, {pipeline_mode = #tpu.pipeline_mode<synchronous>, transform_indices = @transform_3, window_bounds = array<i64: 8, 128>}, {transform_indices = @transform_4, window_bounds = array<i64: 1, 1, 8>}]} {
    %c8_i32 = arith.constant 8 : i32
    %0 = arith.muli %arg0, %c8_i32 : i32
    %c0_i32 = arith.constant 0 : i32
    %c8_i32_0 = arith.constant 8 : i32
    %1 = arith.addi %c0_i32, %c8_i32_0 : i32
    %c1_i32 = arith.constant 1 : i32
    scf.for %arg11 = %c0_i32 to %1 step %c1_i32  : i32 {
      %c1_i32_39 = arith.constant 1 : i32
      %58 = arith.muli %arg11, %c1_i32_39 : i32
      %c0_i32_40 = arith.constant 0 : i32
      %59 = arith.addi %c0_i32_40, %58 : i32
      %60 = arith.addi %0, %59 : i32
      %61 = arith.index_cast %60 : i32 to index
      %62 = memref.load %arg1[%61] : memref<8xi32, #tpu.memory_space<smem>>
      %63 = arith.addi %0, %59 : i32
      %64 = arith.index_cast %63 : i32 to index
      %65 = memref.load %arg2[%64] : memref<8xi32, #tpu.memory_space<smem>>
      %c0_i32_41 = arith.constant 0 : i32
      %66 = tpu.memref_slice %arg3[%62, %c0_i32_41] : memref<32x16xf32, #tpu.memory_space<any>> -> memref<1x16xf32, #tpu.memory_space<any>>
      %c0_i32_42 = arith.constant 0 : i32
      %67 = tpu.memref_slice %arg8[%59, %c0_i32_42] : memref<8x16xf32, #tpu.memory_space<vmem>> -> memref<1x16xf32, #tpu.memory_space<vmem>>
      tpu.enqueue_dma source(%66 : memref<1x16xf32, #tpu.memory_space<any>>) target(%67 : memref<1x16xf32, #tpu.memory_space<vmem>>) target_semaphore(%arg10 : memref<!tpu.dma_semaphore, #tpu.memory_space<semaphore_mem>>)
      %c0_i32_43 = arith.constant 0 : i32
      %68 = tpu.memref_slice %arg4[%65, %c0_i32_43] : memref<32x16xf32, #tpu.memory_space<any>> -> memref<1x16xf32, #tpu.memory_space<any>>
      %c0_i32_44 = arith.constant 0 : i32
      %69 = tpu.memref_slice %arg9[%59, %c0_i32_44] : memref<8x16xf32, #tpu.memory_space<vmem>> -> memref<1x16xf32, #tpu.memory_space<vmem>>
      tpu.enqueue_dma source(%68 : memref<1x16xf32, #tpu.memory_space<any>>) target(%69 : memref<1x16xf32, #tpu.memory_space<vmem>>) target_semaphore(%arg10 : memref<!tpu.dma_semaphore, #tpu.memory_space<semaphore_mem>>)
    }
    %c8_i32_1 = arith.constant 8 : i32
    %c0_i32_2 = arith.constant 0 : i32
    %c8_i32_3 = arith.constant 8 : i32
    %2 = arith.addi %c0_i32_2, %c8_i32_3 : i32
    %c1_i32_4 = arith.constant 1 : i32
    scf.for %arg11 = %c0_i32_2 to %2 step %c1_i32_4  : i32 {
      %c0_i32_39 = arith.constant 0 : i32
      %c0_i32_40 = arith.constant 0 : i32
      %58 = tpu.memref_slice %arg3[%c0_i32_39, %c0_i32_40] : memref<32x16xf32, #tpu.memory_space<any>> -> memref<1x16xf32, #tpu.memory_space<any>>
      %c0_i32_41 = arith.constant 0 : i32
      %c0_i32_42 = arith.constant 0 : i32
      %59 = tpu.memref_slice %arg8[%c0_i32_41, %c0_i32_42] : memref<8x16xf32, #tpu.memory_space<vmem>> -> memref<1x16xf32, #tpu.memory_space<vmem>>
      tpu.wait_dma2 semaphore(%arg10 : memref<!tpu.dma_semaphore, #tpu.memory_space<semaphore_mem>>) src(%58 : memref<1x16xf32, #tpu.memory_space<any>>) dst(%59 : memref<1x16xf32, #tpu.memory_space<vmem>>)
      %c0_i32_43 = arith.constant 0 : i32
      %c0_i32_44 = arith.constant 0 : i32
      %60 = tpu.memref_slice %arg4[%c0_i32_43, %c0_i32_44] : memref<32x16xf32, #tpu.memory_space<any>> -> memref<1x16xf32, #tpu.memory_space<any>>
      %c0_i32_45 = arith.constant 0 : i32
      %c0_i32_46 = arith.constant 0 : i32
      %61 = tpu.memref_slice %arg9[%c0_i32_45, %c0_i32_46] : memref<8x16xf32, #tpu.memory_space<vmem>> -> memref<1x16xf32, #tpu.memory_space<vmem>>
      tpu.wait_dma2 semaphore(%arg10 : memref<!tpu.dma_semaphore, #tpu.memory_space<semaphore_mem>>) src(%60 : memref<1x16xf32, #tpu.memory_space<any>>) dst(%61 : memref<1x16xf32, #tpu.memory_space<vmem>>)
    }
    %c0 = arith.constant 0 : index
    %c0_5 = arith.constant 0 : index
    %3 = vector.load %arg8[%c0, %c0_5] : memref<8x16xf32, #tpu.memory_space<vmem>>, vector<8x16xf32>
    %c0_6 = arith.constant 0 : index
    %c0_7 = arith.constant 0 : index
    %4 = vector.load %arg9[%c0_6, %c0_7] : memref<8x16xf32, #tpu.memory_space<vmem>>, vector<8x16xf32>
    %5 = vector.extract_strided_slice %3 {offsets = [0, 8], sizes = [8, 8], strides = [1, 1]} : vector<8x16xf32> to vector<8x8xf32>
    %6 = vector.extract_strided_slice %4 {offsets = [0, 8], sizes = [8, 8], strides = [1, 1]} : vector<8x16xf32> to vector<8x8xf32>
    %7 = arith.mulf %5, %6 : vector<8x8xf32>
    %c0_8 = arith.constant 0 : index
    %c0_9 = arith.constant 0 : index
    %c0_10 = arith.constant 0 : index
    %8 = vector.load %arg5[%c0_8, %c0_9, %c0_10] : memref<4x128x128xf32, #tpu.memory_space<vmem>>, vector<1x16x128xf32>
    %9 = vector.shape_cast %8 : vector<1x16x128xf32> to vector<16x128xf32>
    %cst = arith.constant dense<0.000000e+00> : vector<8x128xf32>
    %10 = tpu.matmul %3, %9, %cst {dimension_numbers = #tpu.dot_dimension_numbers<[1], [0], [0], [1], [0, 0, 1, 1], [], []>} : vector<8x16xf32>, vector<16x128xf32>, vector<8x128xf32> -> vector<8x128xf32>
    %c1 = arith.constant 1 : index
    %c0_11 = arith.constant 0 : index
    %c0_12 = arith.constant 0 : index
    %11 = vector.load %arg5[%c1, %c0_11, %c0_12] : memref<4x128x128xf32, #tpu.memory_space<vmem>>, vector<1x16x128xf32>
    %12 = vector.shape_cast %11 : vector<1x16x128xf32> to vector<16x128xf32>
    %cst_13 = arith.constant dense<0.000000e+00> : vector<8x128xf32>
    %13 = tpu.matmul %4, %12, %cst_13 {dimension_numbers = #tpu.dot_dimension_numbers<[1], [0], [0], [1], [0, 0, 1, 1], [], []>} : vector<8x16xf32>, vector<16x128xf32>, vector<8x128xf32> -> vector<8x128xf32>
    %14 = arith.addf %10, %13 : vector<8x128xf32>
    %c0_14 = arith.constant 0 : index
    %c0_15 = arith.constant 0 : index
    %15 = vector.load %arg6[%c0_14, %c0_15] : memref<8x128xf32, #tpu.memory_space<vmem>>, vector<1x128xf32>
    %16 = vector.broadcast %15 : vector<1x128xf32> to vector<8x128xf32>
    %17 = arith.addf %14, %16 : vector<8x128xf32>
    %cst_16 = arith.constant 0.000000e+00 : f32
    %18 = vector.broadcast %cst_16 : f32 to vector<8x128xf32>
    %19 = arith.maximumf %17, %18 : vector<8x128xf32>
    %c2 = arith.constant 2 : index
    %c0_17 = arith.constant 0 : index
    %c0_18 = arith.constant 0 : index
    %20 = vector.load %arg5[%c2, %c0_17, %c0_18] : memref<4x128x128xf32, #tpu.memory_space<vmem>>, vector<1x128x128xf32>
    %21 = vector.shape_cast %20 : vector<1x128x128xf32> to vector<128x128xf32>
    %cst_19 = arith.constant dense<0.000000e+00> : vector<8x128xf32>
    %22 = tpu.matmul %19, %21, %cst_19 {dimension_numbers = #tpu.dot_dimension_numbers<[1], [0], [0], [1], [0, 0, 1, 1], [], []>} : vector<8x128xf32>, vector<128x128xf32>, vector<8x128xf32> -> vector<8x128xf32>
    %c1_20 = arith.constant 1 : index
    %c0_21 = arith.constant 0 : index
    %23 = vector.load %arg6[%c1_20, %c0_21] : memref<8x128xf32, #tpu.memory_space<vmem>>, vector<1x128xf32>
    %24 = vector.broadcast %23 : vector<1x128xf32> to vector<8x128xf32>
    %25 = arith.addf %22, %24 : vector<8x128xf32>
    %cst_22 = arith.constant 0.000000e+00 : f32
    %26 = vector.broadcast %cst_22 : f32 to vector<8x128xf32>
    %27 = arith.maximumf %25, %26 : vector<8x128xf32>
    %c3 = arith.constant 3 : index
    %c0_23 = arith.constant 0 : index
    %c0_24 = arith.constant 0 : index
    %28 = vector.load %arg5[%c3, %c0_23, %c0_24] : memref<4x128x128xf32, #tpu.memory_space<vmem>>, vector<1x128x128xf32>
    %29 = vector.shape_cast %28 : vector<1x128x128xf32> to vector<128x128xf32>
    %cst_25 = arith.constant dense<0.000000e+00> : vector<8x128xf32>
    %30 = tpu.matmul %27, %29, %cst_25 {dimension_numbers = #tpu.dot_dimension_numbers<[1], [0], [0], [1], [0, 0, 1, 1], [], []>} : vector<8x128xf32>, vector<128x128xf32>, vector<8x128xf32> -> vector<8x128xf32>
    %c2_26 = arith.constant 2 : index
    %c0_27 = arith.constant 0 : index
    %31 = vector.load %arg6[%c2_26, %c0_27] : memref<8x128xf32, #tpu.memory_space<vmem>>, vector<1x128xf32>
    %32 = vector.broadcast %31 : vector<1x128xf32> to vector<8x128xf32>
    %33 = arith.addf %30, %32 : vector<8x128xf32>
    %cst_28 = arith.constant 0.000000e+00 : f32
    %34 = vector.broadcast %cst_28 : f32 to vector<8x128xf32>
    %35 = arith.maximumf %33, %34 : vector<8x128xf32>
    %c3_29 = arith.constant 3 : index
    %c0_30 = arith.constant 0 : index
    %36 = vector.load %arg6[%c3_29, %c0_30] : memref<8x128xf32, #tpu.memory_space<vmem>>, vector<1x128xf32>
    %c4 = arith.constant 4 : index
    %c0_31 = arith.constant 0 : index
    %37 = vector.load %arg6[%c4, %c0_31] : memref<8x128xf32, #tpu.memory_space<vmem>>, vector<1x8xf32>
    %c5 = arith.constant 5 : index
    %c0_32 = arith.constant 0 : index
    %38 = vector.load %arg6[%c5, %c0_32] : memref<8x128xf32, #tpu.memory_space<vmem>>, vector<1x1xf32>
    %39 = vector.broadcast %36 : vector<1x128xf32> to vector<8x128xf32>
    %40 = arith.mulf %35, %39 : vector<8x128xf32>
    %cst_33 = arith.constant dense<0.000000e+00> : vector<8xf32>
    %41 = vector.multi_reduction <add>, %40, %cst_33 [1] : vector<8x128xf32> to vector<8xf32>
    %42 = vector.shape_cast %41 : vector<8xf32> to vector<8x1xf32>
    %43 = vector.broadcast %37 : vector<1x8xf32> to vector<8x8xf32>
    %44 = arith.mulf %7, %43 : vector<8x8xf32>
    %cst_34 = arith.constant dense<0.000000e+00> : vector<8xf32>
    %45 = vector.multi_reduction <add>, %44, %cst_34 [1] : vector<8x8xf32> to vector<8xf32>
    %46 = vector.shape_cast %45 : vector<8xf32> to vector<8x1xf32>
    %47 = arith.addf %42, %46 : vector<8x1xf32>
    %48 = vector.broadcast %38 : vector<1x1xf32> to vector<8x1xf32>
    %49 = arith.addf %47, %48 : vector<8x1xf32>
    %50 = arith.negf %49 : vector<8x1xf32>
    %51 = math.exp %50 : vector<8x1xf32>
    %cst_35 = arith.constant 1.000000e+00 : f32
    %52 = vector.broadcast %cst_35 : f32 to vector<8x1xf32>
    %53 = arith.addf %52, %51 : vector<8x1xf32>
    %54 = arith.divf %52, %53 : vector<8x1xf32>
    %55 = tpu.transpose %54, [1, 0] : vector<8x1xf32> -> vector<1x8xf32>
    %56 = vector.shape_cast %55 : vector<1x8xf32> to vector<1x1x8xf32>
    %c0_36 = arith.constant 0 : index
    %c0_37 = arith.constant 0 : index
    %c0_38 = arith.constant 0 : index
    %57 = vector.load %arg7[%c0_36, %c0_37, %c0_38] : memref<1x1x8xf32, #tpu.memory_space<vmem>>, vector<1x1x8xf32>
    tpu.vector_store %arg7[%c0_36, %c0_37, %c0_38], %56 {strides = array<i32>} : memref<1x1x8xf32, #tpu.memory_space<vmem>>, vector<1x1x8xf32>,
    return
  }
  func.func @transform_2(%arg0: i32, %arg1: memref<8xi32, #tpu.memory_space<smem>>, %arg2: memref<8xi32, #tpu.memory_space<smem>>) -> (i32, i32, i32) {
    %c0_i32 = arith.constant 0 : i32
    %c0_i32_0 = arith.constant 0 : i32
    %c0_i32_1 = arith.constant 0 : i32
    %c0_i32_2 = arith.constant 0 : i32
    return %c0_i32, %c0_i32_0, %c0_i32_1 : i32, i32, i32
  }
  func.func @transform_3(%arg0: i32, %arg1: memref<8xi32, #tpu.memory_space<smem>>, %arg2: memref<8xi32, #tpu.memory_space<smem>>) -> (i32, i32) {
    %c0_i32 = arith.constant 0 : i32
    %c0_i32_0 = arith.constant 0 : i32
    %c0_i32_1 = arith.constant 0 : i32
    return %c0_i32, %c0_i32_0 : i32, i32
  }
  func.func @transform_4(%arg0: i32, %arg1: memref<8xi32, #tpu.memory_space<smem>>, %arg2: memref<8xi32, #tpu.memory_space<smem>>) -> (i32, i32, i32) {
    %c0_i32 = arith.constant 0 : i32
    %c0_i32_0 = arith.constant 0 : i32
    %c0_i32_1 = arith.constant 0 : i32
    return %arg0, %c0_i32, %c0_i32_0 : i32, i32, i32
  }
}

</mosaic_0001>

<bundles_post_ra>
// kernel: neumf.1
= control target key start
LH: loop header
LB: loop body
LE: loop exit
PB: predicated region body
PF: predicated region fallthrough
CT: control target
= control target key end

     0   :  { %s1070_s0 = inlined_call_operand.vmem [shape: s32[8], index: 0, kind: input, shape index: {}]   ;;  %s1071_s2 = inlined_call_operand.vmem [shape: f32[32,16], index: 2, kind: input, shape index: {}]   ;;  %s1072_s3 = inlined_call_operand.vmem [shape: f32[32,16], index: 3, kind: input, shape index: {}]   ;;  %s1073_s4 = inlined_call_operand.hbm [shape: f32[4,128,128], index: 4, kind: input, shape index: {}]   ;;  %s1074_s5 = inlined_call_operand.vmem [shape: f32[8,128], index: 5, kind: input, shape index: {}]   ;;  %s1075_s6 = inlined_call_operand.hbm [shape: f32[1,1,8], index: 6, kind: output, shape index: {}]   ;;  %s1076_s1 = inlined_call_operand.vmem [shape: s32[8], index: 1, kind: input, shape index: {}]  }
   0x1   :  { %s11_s23 = sshll.u32 %s1070_s0, 4  ;;  %s15_s26 = sshll.u32 %s1076_s1, 4  ;;  %s12_s23 = int_to_ptr.vmem [resolvable:$true] %s11_s23  ;;  %s16_s26 = int_to_ptr.vmem [resolvable:$true] %s15_s26 }
   0x2   :  { %s847_s27 = scalar_lea.vmem %s12_s23, 16  ;;  %p852_p1 = scmp.lt.s32.totalorder %s12_s23, %s12_s23 }
   0x3   :  { %p848_p0 = scmp.ne.s32.totalorder %s12_s23, %s847_s27  ;;  %p853_p2 = scmp.lt.s32.totalorder %s847_s27, %s847_s27 }
   0x5   :  { %p854_p3 = por %p853_p2, %p852_p1 }
   0x7   :  { %p855_p4 = pnand %p854_p3, %p848_p0 }
   0x9   :  { %858 = shalt.err (!%p855_p4)  }
   0xa   :  { %s939_s28 = smov [#allocation6]   ;;  %s859_s29 = scalar_lea.vmem %s16_s26, 16 }
   0xb   :  { %14 = dma.vmem_to_smem %s12_s23, 16, %s939_s28, [#allocation5] }
   0xc   :  { %p860_p5 = scmp.ne.s32.totalorder %s16_s26, %s859_s29  ;;  %p864_p6 = scmp.lt.s32.totalorder %s16_s26, %s16_s26 }
   0xd   :  { %p865_p7 = scmp.lt.s32.totalorder %s859_s29, %s859_s29 }
   0xf   :  { %p866_p8 = por %p865_p7, %p864_p6 }
  0x11   :  { %p867_p9 = pnand %p866_p8, %p860_p5 }
  0x13   :  { %870 = shalt.err (!%p867_p9)  }
  0x14   :  { %s940_s0 = smov [#allocation7]  }
  0x15   :  { %18 = dma.vmem_to_smem %s16_s26, 16, %s940_s0, [#allocation5] }
  0x16   :  { %923 = dma.done.wait [#allocation5], 32 }
  0x17   :  { %924 = vsyncadd [#allocation5], 4294967264 }
  0x18   :  { %20 = sfence }
  0x19   :  { %21 = vsyncpa [#allocation9], 0 }
  0x1a   :  { %22 = vsyncpa [#allocation10], 0  ;;  %s941_s1 = smov [#allocation8]   ;;  %s871_s9 = scalar_lea.hbm %s1073_s4, 8192 }
  0x1b   :  { %s28_s30 = sshll.u32 %s941_s1, 4  ;;  %p872_p10 = scmp.ne.s32.totalorder %s1073_s4, %s871_s9  ;;  %s29_s30 = int_to_ptr.vmem [resolvable:$true] %s28_s30 }
  0x1c   :  { %p875_p11 = scmp.lt.u32.totalorder %s871_s9, %s1073_s4 }
  0x1e   :  { %p877_p12 = pnand %p875_p11, %p872_p10 }
  0x20   :  { %880 = shalt.err (!%p877_p12)
}
  0x21   :  { %s881_s14 = scalar_lea.vmem %s29_s30, 8192  ;;  %p886_p0 = scmp.lt.s32.totalorder %s29_s30, %s29_s30 }
  0x22   :  { %p882_p13 = scmp.ne.s32.totalorder %s29_s30, %s881_s14  ;;  %p887_p1 = scmp.lt.s32.totalorder %s881_s14, %s881_s14 }
  0x24   :  { %p888_p2 = por %p887_p1, %p886_p0 }
  0x26   :  { %p889_p3 = pnand %p888_p2, %p882_p13 }
  0x28   :  { %892 = shalt.err (!%p889_p3)
}
  0x29   :  { %s942_s15 = smov 128   ;;  %s943_s16 = smov 8  }
  0x2a   :  { %34 = dma.hbm_to_vmem [thread:$0]  %s1073_s4, 8192, %s29_s30, [#allocation9], %s942_s15, %s942_s15, %s943_s16  }
  0x2b   :  { %925 = dma.done.wait [#allocation9], 8192  }
  0x2c   :  { %926 = vsyncadd [#allocation9], 4294959104  ;;  %s931_s19 = smov 0  }
  0x2d LB: > { %s48_s20 = sld [smem:[#allocation6 + %s933_s19]]  ;;  %s51_s25 = scalar_lea.vmem [#allocation2], %s933_s19  ;;  %s933_s19 = sphi %s931_s19, %s46_s19  }
  0x2e   : > { %s49_s21 = sld [smem:[#allocation7 + %s933_s19]] }
  0x33   : > { %s50_s24 = scalar_lea.vmem %s1071_s2, %s48_s20 }
  0x34   : > { %v69_v0 = vld [vmem:[%s50_s24] sm:$0x1] }
  0x35   : > { %70 = vst [vmem:[%s51_s25] sm:$0x1] %v69_v0 }
  0x36   : > { %95 = vsyncadd [#allocation4], 16  ;;  %s96_s4 = scalar_lea.vmem %s1072_s3, %s49_s21  ;;  %s97_s28 = scalar_lea.vmem [#allocation3], %s933_s19 }
  0x37   : > { %v115_v1 = vld [vmem:[%s96_s4] sm:$0x1] }
  0x38   : > { %116 = vst [vmem:[%s97_s28] sm:$0x1] %v115_v1 }
  0x39   : > { %141 = vsyncadd [#allocation4], 16  ;;  %s46_s19 = sadd.s32 1, %s933_s19  }
  0x3a   : > { %p43_p4 = scmp.ge.s32.totalorder %s46_s19, 8  }
  0x3b   :  { %s935_s29 = smov (%p43_p4), 0  }
  0x3c   :  { %45 = sbr.rel (!%p43_p4) target bundleno = 45 (0x2d), region = 133 }
  0x43 LB: > { %927 = dma.done.wait [#allocation4], 32  ;;  %s937_s29 = sphi %s935_s29, %s147_s29  }
  0x44   : > { %928 = vsyncadd [#allocation4], 4294967264  ;;  %s147_s29 = sadd.s32 1, %s937_s29  }
  0x45   : > { %p144_p5 = scmp.ge.s32.totalorder %s147_s29, 8  }
  0x46   :  { %v159_v2 = vld [vmem:[#allocation8 + $0x80] sm:$0xff] (%p144_p5)  ;;  %v160_v3 = vld [vmem:[#allocation8 + $0x88] sm:$0xff] (%p144_p5)  ;;  %v944_v5 = vmov (%p144_p5), 0.0|0.0   ;;  %vm945_vm0 = vmmov (%p144_p5), 0   ;;  %v946_v9 = vmov (%p144_p5), 0.0   ;;  %v1013_v12 = vld [vmem:[#allocation3] sm:$0xff] (%p144_p5) }
  0x47   :  { %146 = sbr.rel (!%p144_p5) target bundleno = 67 (0x43), region = 144  ;;  %v156_v4 = vld [vmem:[#allocation8] sm:$0xff] (%p144_p5)  ;;  %763 = vmatprep.subr.bf16.mxu0 (%p144_p5), %v944_v5  ;;  %766 = vmatprep.subr.bf16.mxu1 (%p144_p5), %v944_v5  ;;  %v764_v6 = vpack.c.bf16 (%p144_p5), %v160_v3, %v159_v2  ;;  %v157_v7 = vld [vmem:[#allocation8 + $0x8] sm:$0xff] (%p144_p5)  ;;  %vm161_vm1 = vcmask (%p144_p5), 130048   ;;  %v1015_v14 = vld [vmem:[#allocation2] sm:$0xff] (%p144_p5)  ;;  %s947_s30 = smov (%p144_p5), 120  }
  0x48   :  { %v767_v8 = vpack.c.bf16 (%p144_p5), %v157_v7, %v156_v4  ;;  %683 = vmatprep.mubr.msk.f32.mxu0 (%p144_p5), %vm945_vm0, %v946_v9  ;;  %690 = vmatprep.mubr.msk.f32.mxu1 (%p144_p5), %vm945_vm0, %v946_v9  ;;  %v316_v10 = vld [vmem:[#allocation8 + $0x100] sm:$0xff] (%p144_p5)  ;;  %v317_v11 = vld [vmem:[#allocation8 + $0x108] sm:$0xff] (%p144_p5)  ;;  %v318_v15 = vld [vmem:[#allocation8 + $0x110] sm:$0xff] (%p144_p5)  ;;  %vm524_vm2 = vcmask (%p144_p5), 64512   ;;  %s948_s15 = smov (%p144_p5), [#allocation11]   ;;  %vm572_vm3 = vcmask (%p144_p5), 57344  }
  0x49   :  { %765 = vmatpush3.bf16.msra.mxu0 (%p144_p5), %v764_v6  ;;  %v770_v13 = vpack.c.bf16 (%p144_p5), %v317_v11, %v316_v10  ;;  %v319_v16 = vld [vmem:[#allocation8 + $0x118] sm:$0xff] (%p144_p5)  ;;  %v320_v18 = vld [vmem:[#allocation8 + $0x120] sm:$0xff] (%p144_p5)  ;;  %v321_v19 = vld [vmem:[#allocation8 + $0x128] sm:$0xff] (%p144_p5) }
  0x4a   :  { %768 = vmatpush3.bf16.msra.mxu1 (%p144_p5), %v767_v8  ;;  %769 = vmatprep.subr.bf16.mxu0 (%p144_p5), %v944_v5  ;;  %v773_v17 = vpack.c.bf16 (%p144_p5), %v319_v16, %v318_v15  ;;  %v776_v20 = vpack.c.bf16 (%p144_p5), %v321_v19, %v320_v18  ;;  %v322_v21 = vld [vmem:[#allocation8 + $0x130] sm:$0xff] (%p144_p5)  ;;  %v323_v22 = vld [vmem:[#allocation8 + $0x138] sm:$0xff] (%p144_p5)  ;;  %v324_v24 = vld [vmem:[#allocation8 + $0x140] sm:$0xff] (%p144_p5) }
  0x4b   :  { %793 = vmatprep.subr.bf16.mxu1 (%p144_p5), %v944_v5  ;;  %v779_v23 = vpack.c.bf16 (%p144_p5), %v323_v22, %v322_v21  ;;  %v325_v25 = vld [vmem:[#allocation8 + $0x148] sm:$0xff] (%p144_p5)  ;;  %v326_v27 = vld [vmem:[#allocation8 + $0x150] sm:$0xff] (%p144_p5)  ;;  %v327_v28 = vld [vmem:[#allocation8 + $0x158] sm:$0xff] (%p144_p5) }
  0x4c   :  { %684 = vmatmul.mubr.msk.f32.vlgmr.msra.gmra.mrb[0].mxu0 (%p144_p5), %vm161_vm1, %v1013_v12  ;;  %v782_v26 = vpack.c.bf16 (%p144_p5), %v325_v25, %v324_v24  ;;  %v785_v29 = vpack.c.bf16 (%p144_p5), %v327_v28, %v326_v27  ;;  %v328_v30 = vld [vmem:[#allocation8 + $0x160] sm:$0xff] (%p144_p5)  ;;  %v329_v31 = vld [vmem:[#allocation8 + $0x168] sm:$0xff] (%p144_p5)  ;;  %v330_v33 = vld [vmem:[#allocation8 + $0x170] sm:$0xff] (%p144_p5) }
  0x4d   :  { %691 = vmatmul.mubr.msk.f32.vlgmr.msra.gmra.mrb[0].mxu1 (%p144_p5), %vm161_vm1, %v1015_v14  ;;  %771 = vmatpush3.bf16.msra.mxu0 (%p144_p5), %v770_v13  ;;  %v788_v32 = vpack.c.bf16 (%p144_p5), %v329_v31, %v328_v30  ;;  %v331_v34 = vld [vmem:[#allocation8 + $0x178] sm:$0xff] (%p144_p5)  ;;  %v409_v36 = vld [vmem:[#allocation8 + $0x180] sm:$0xff] (%p144_p5)  ;;  %v410_v37 = vld [vmem:[#allocation8 + $0x188] sm:$0xff] (%p144_p5) }
  0x4e   :  { %772 = vmatprep.subr.bf16.mxu0 %v944_v5  ;;  %725 = vmatprep.mubr.msk.f32.mxu0 %vm945_vm0, %v946_v9  ;;  %v791_v35 = vpack.c.bf16 %v331_v34, %v330_v33  ;;  %v411_v38 = vld [vmem:[#allocation8 + $0x190] sm:$0xff]  ;;  %v794_v39 = vpack.c.bf16 %v410_v37, %v409_v36  ;;  %v412_v40 = vld [vmem:[#allocation8 + $0x198] sm:$0xff]  ;;  %v413_v43 = vld [vmem:[#allocation8 + $0x1a0] sm:$0xff] }
  0x4f   :  { %760 = vmatprep.mubr.msk.f32.mxu1 %vm945_vm0, %v946_v9  ;;  %v797_v41 = vpack.c.bf16 %v412_v40, %v411_v38  ;;  %v635_v42 = vld [vmem:[%s1074_s5 + $0x4] ss:$0 sm:$0xff]  ;;  %v414_v44 = vld [vmem:[#allocation8 + $0x1a8] sm:$0xff]  ;;  %v416_v47 = vld [vmem:[#allocation8 + $0x1b8] sm:$0xff] }
  0x50   :  { %795 = vmatpush3.bf16.msra.mxu1 %v794_v39  ;;  %516 = vrot.lane.b32.xlu0 %v635_v42, %s943_s16  ;;  %v800_v45 = vpack.c.bf16 %v414_v44, %v413_v43  ;;  %v415_v46 = vld [vmem:[#allocation8 + $0x1b0] sm:$0xff]  ;;  %v417_v49 = vld [vmem:[#allocation8 + $0x1c0] sm:$0xff]  ;;  %v418_v50 = vld [vmem:[#allocation8 + $0x1c8] sm:$0xff]  ;;  %s580_s16 = sshll.u32 %s948_s15, 4  ;;  %s581_s16 = int_to_ptr.vmem [resolvable:$true] %s580_s16 }
  0x51   :  { %774 = vmatpush3.bf16.msra.mxu0 %v773_v17  ;;  %796 = vmatprep.subr.bf16.mxu1 %v944_v5  ;;  %v803_v48 = vpack.c.bf16 %v416_v47, %v415_v46  ;;  %v806_v51 = vpack.c.bf16 %v418_v50, %v417_v49  ;;  %v419_v52 = vld [vmem:[#allocation8 + $0x1d0] sm:$0xff]  ;;  %v420_v53 = vld [vmem:[#allocation8 + $0x1d8] sm:$0xff]  ;;  %v421_v55 = vld [vmem:[#allocation8 + $0x1e0] sm:$0xff]  ;;  %s893_s17 = scalar_lea.vmem %s581_s16, 16  ;;  %s897_s18 = scalar_lea.vmem %s581_s16, 32 }
  0x52   :  { %775 = vmatprep.subr.bf16.mxu0 %v944_v5  ;;  %v809_v54 = vpack.c.bf16 %v420_v53, %v419_v52  ;;  %v422_v56 = vld [vmem:[#allocation8 + $0x1e8] sm:$0xff]  ;;  %v631_v60 = vld [vmem:[%s1074_s5] ss:$0 sm:$0xff]  ;;  %v424_v3 = vld [vmem:[#allocation8 + $0x1f8] sm:$0xff]  ;;  %p894_p6 = scmp.ne.s32.totalorder %s581_s16, %s893_s17  ;;  %p898_p7 = scmp.lt.s32.totalorder %s581_s16, %s581_s16 }
  0x53   :  { %v812_v57 = vpack.c.bf16 %v422_v56, %v421_v55  ;;  %v423_v2 = vld [vmem:[#allocation8 + $0x1f0] sm:$0xff]  ;;  %p899_p8 = scmp.lt.s32.totalorder %s897_s18, %s893_s17 }
  0x54   :  { %798 = vmatpush3.bf16.msra.mxu1 %v797_v41  ;;  %v815_v4 = vpack.c.bf16 %v424_v3, %v423_v2  ;;  %v632_v8 = vld [vmem:[%s1074_s5 + $0x1] ss:$0 sm:$0xff]  ;;  %v633_v15 = vld [vmem:[%s1074_s5 + $0x2] ss:$0 sm:$0xff] }
  0x55   :  { %777 = vmatpush3.bf16.msra.mxu0 %v776_v20  ;;  %799 = vmatprep.subr.bf16.mxu1 %v944_v5  ;;  %p900_p9 = por %p899_p8, %p898_p7 }
  0x56   :  { %778 = vmatprep.subr.bf16.mxu0 %v944_v5 }
  0x57   :  { %p901_p10 = pnand %p900_p9, %p894_p6 }
  0x58   :  { %801 = vmatpush3.bf16.msra.mxu1 %v800_v45 }
  0x59   :  { %780 = vmatpush3.bf16.msra.mxu0 %v779_v23  ;;  %802 = vmatprep.subr.bf16.mxu1 %v944_v5  ;;  %v636_v23 = vld [vmem:[%s1074_s5 + $0x5] ss:$0 sm:$0xff] }
  0x5a   :  { %781 = vmatprep.subr.bf16.mxu0 %v944_v5 }
  0x5c   :  { %804 = vmatpush3.bf16.msra.mxu1 %v803_v48 }
  0x5d   :  { %783 = vmatpush3.bf16.msra.mxu0 %v782_v26  ;;  %805 = vmatprep.subr.bf16.mxu1 %v944_v5 }
  0x5e   :  { %784 = vmatprep.subr.bf16.mxu0 %v944_v5 }
  0x60   :  { %807 = vmatpush3.bf16.msra.mxu1 %v806_v51 }
  0x61   :  { %786 = vmatpush3.bf16.msra.mxu0 %v785_v29  ;;  %808 = vmatprep.subr.bf16.mxu1 %v944_v5 }
  0x62   :  { %787 = vmatprep.subr.bf16.mxu0 %v944_v5 }
  0x64   :  { %810 = vmatpush3.bf16.msra.mxu1 %v809_v54 }
  0x65   :  { %789 = vmatpush3.bf16.msra.mxu0 %v788_v32  ;;  %811 = vmatprep.subr.bf16.mxu1 %v944_v5 }
  0x66   :  { %790 = vmatprep.subr.bf16.mxu0 %v944_v5 }
  0x68   :  { %813 = vmatpush3.bf16.msra.mxu1 %v812_v57 }
  0x69   :  { %792 = vmatpush3.bf16.msra.mxu0 %v791_v35  ;;  %814 = vmatprep.subr.bf16.mxu1 %v944_v5  ;;  %v155_v5 = vmul.f32 %v1013_v12, %v1015_v14  ;;  %v634_v12 = vld [vmem:[%s1074_s5 + $0x3] ss:$0 sm:$0xff] }
  0x6c   :  { %816 = vmatpush3.bf16.msra.mxu1 %v815_v4 }
  0xc2   :  { %v517_v6 = vpop.permute.xlu0 %516 }
  0xc3   :  { %v519_v7 = vmul.f32 %v517_v6, %v155_v5 }
  0xc5   :  { %521 = vrot.lane.b32.xlu0 %v519_v7, %s947_s30 }
 0x11f   :  { %v231_v58 = vpop.f32.mrb[0].mxu0 }
 0x120   :  { %v304_v59 = vpop.f32.mrb[0].mxu1  ;;  %v685_v61 = vpop.f32.mrb[1].mxu0 }
 0x121   :  { %v305_v62 = vadd.f32 %v304_v59, %v231_v58  ;;  %v692_v63 = vpop.f32.mrb[1].mxu1 }
 0x123   :  { %v313_v0 = vadd.f32 %v631_v60, %v305_v62 }
 0x125   :  { %v314_v1 = vmax.f32 %v313_v0, 0.0 }
 0x127   :  { %726 = vmatmul.mubr.f32.vlgmr.msra.gmra.mrb[2].mxu0 %v314_v1 }
 0x137   :  { %v522_v20 = vpop.permute.xlu0 %521 }
 0x138   :  { %v525_v21 = vsel %vm524_vm2, %v522_v20, 0.0 }
 0x1fa   :  { %v403_v9 = vpop.f32.mrb[2].mxu0 }
 0x1fb   :  { %v404_v10 = vadd.f32 %v632_v8, %v403_v9  ;;  %v727_v11 = vpop.f32.mrb[3].mxu0 }
 0x1fd   :  { %v407_v13 = vmax.f32 %v404_v10, 0.0 }
 0x1ff   :  { %761 = vmatmul.mubr.f32.vlgmr.msra.gmra.mrb[2].mxu1 %v407_v13 }
 0x2d2   :  { %v496_v16 = vpop.f32.mrb[2].mxu1 }
 0x2d3   :  { %v497_v17 = vadd.f32 %v633_v15, %v496_v16  ;;  %v762_v18 = vpop.f32.mrb[3].mxu1 }
 0x2d5   :  { %v500_v14 = vmax.f32 %v497_v17, 0.0 }
 0x2d7   :  { %v508_v19 = vmul.f32 %v634_v12, %v500_v14 }
 0x2d9   :  { %509 = vadd.xlane.f32.xlu1 %v508_v19 }
 0x2dd   :  { %526 = vadd.xlane.f32.xlu1 %v525_v21 }
 0x366   :  { %v510_v22 = vpop.xlane.xlu1 %509 }
 0x36a   :  { %v527_v24 = vpop.xlane.xlu1 %526 }
 0x36b   :  { %v528_v25 = vadd.f32 %v527_v24, %v510_v22 }
 0x36d   :  { %v533_v26 = vadd.f32 %v636_v23, %v528_v25 }
 0x36f   :  { %v637_v27 = vmul.f32 -1.442695, %v533_v26 }
 0x371   :  { %843 = vpow2.f32 %v637_v27 }
 0x37b   :  { %v844_v28 = vpop.eup %843 }
 0x37c   :  { %v537_v29 = vadd.f32 1.0, %v844_v28 }
 0x37e   :  { %845 = vrcp.f32 %v537_v29 }
 0x388   :  { %v846_v30 = vpop.eup %845 }
 0x389   :  { %540 = vxpose.xlu0.b32.start.end [1/1] (short) (narrow) %v846_v30, 8 }
 0x409   :  { %v556_v31 = vpop.trf.xlu0 }
 0x40a   :  { %573 = vst.msk [vmem:[#allocation11] sm:$0x1] %vm572_vm3, %v556_v31 }
 0x40b   :  { %904 = shalt.err (!%p901_p10)
}
 0x40c   :  { %s905_s20 = scalar_lea.hbm %s1075_s6, 16 }
 0x40d   :  { %p906_p11 = scmp.ne.s32.totalorder %s1075_s6, %s905_s20  ;;  %p909_p12 = scmp.lt.u32.totalorder %s905_s20, %s1075_s6 }
 0x40f   :  { %p911_p13 = pnand %p909_p12, %p906_p11 }
 0x411   :  { %914 = shalt.err (!%p911_p13)
}
 0x412   :  { %583 = dma.vmem_to_hbm [thread:$0]  %s581_s16, 16, %s1075_s6, [#allocation10]  }
 0x413   :  { %929 = dma.done.wait [#allocation10], 16  }
 0x414   :  { %930 = vsyncadd [#allocation10], 4294967280 }
 0x415   :  { %587 = vsyncpa [#allocation9], 1 }
 0x416   :  { %588 = vsyncpa [#allocation10], 1 }
 0x417   :  { %589 = vsyncmov [#allocation4] }
 0x41a   :  { %s590_s27 = vpop.sfrf %589 }
 0x41b   :  { %p638_p0 = scmp.ne.s32.totalorder %s590_s27, 0 }
 0x41d   :  { %594 = shalt.err (%p638_p0)  }

</bundles_post_ra>
